<compile_context>
chip_gen: v6e
topology: v6e:2x2x1
jax: 0.10.0
libtpu: 0.0.40
codegen_flags: <defaults>
</compile_context>

<pallas_src>
import functools

import jax
import jax.numpy as jnp
from jax.experimental import pallas as pl
from jax.experimental.pallas import tpu as pltpu


def _round_up(x, m):
    return (x + m - 1) // m * m


# --------------------------------------------------------------------------
# Stage 1: FeatureNet + x-part of fc1_xy (per batch row, row layout).
# --------------------------------------------------------------------------
def _feature_kernel(x_ref, w1_ref, b1_ref, w2_ref, b2_ref, wxy_ref, bxy_ref,
                    out_ref):
    x = x_ref[...]                                                    # (TB, x_dim)
    h = jnp.maximum(
        jnp.dot(x, w1_ref[...], preferred_element_type=jnp.float32) + b1_ref[...],
        0.0)                                                          # (TB, F)
    h = jnp.maximum(
        jnp.dot(h, w2_ref[...], preferred_element_type=jnp.float32) + b2_ref[...],
        0.0)                                                          # (TB, F)
    # x-part of fc1_xy with the fc1_xy bias folded in -> x_proj rows.
    xp = jnp.dot(h, wxy_ref[...], preferred_element_type=jnp.float32) + bxy_ref[...]
    out_ref[...] = xp.astype(out_ref.dtype)                           # (TB, H)


# --------------------------------------------------------------------------
# Stage 2: per-(batch, sample-tile) score, transposed-activation layout.
#   hidden dim H -> sublanes, samples TS -> lanes (lane-dense output).
# --------------------------------------------------------------------------
def _score_kernel(xproj_ref,   # (1, H, 1)  x projection column for this batch row
                  y_ref,       # (1, 1, TS) y samples
                  w1y_ref,     # (H, 1)     fc1_y weight (y_dim == 1)
                  b1y_ref,     # (H, 1)
                  w1f_ref,     # (H, H)     fc1_xy columns acting on y_feature (out,in)
                  w2_ref,      # (H, H)
                  b2_ref,      # (H, 1)
                  w3_ref,      # (H, H)
                  b3_ref,      # (H, 1)
                  w4_ref,      # (1, H)
                  b4_ref,      # (1, 1)
                  out_ref):    # (1, 1, TS)
    xcol = xproj_ref[0]                                              # (H, 1)
    y = y_ref[0]                                                     # (1, TS)

    # fc1_y: broadcast outer product, no matmul, no transpose.
    y_feat = jnp.tanh(w1y_ref[...] * y + b1y_ref[...])               # (H, TS)

    # fc1_xy on concat([x_feature, y_feature]) == x_proj + W_yf @ y_feat.
    h = jnp.tanh(
        xcol + jnp.dot(w1f_ref[...], y_feat, preferred_element_type=jnp.float32))

    # fc2_xy / fc3_xy residual blocks.
    h = jnp.tanh(
        jnp.dot(w2_ref[...], h, preferred_element_type=jnp.float32) + b2_ref[...]) + h
    h = jnp.tanh(
        jnp.dot(w3_ref[...], h, preferred_element_type=jnp.float32) + b3_ref[...]) + h

    # fc4_xy -> lane-dense (1, TS) row of scores.
    score = jnp.dot(w4_ref[...], h, preferred_element_type=jnp.float32) + b4_ref[...]
    out_ref[0] = score.astype(out_ref.dtype)


# --------------------------------------------------------------------------
# Parameters (PyTorch nn.Linear-style init, weights kept in (out, in) form).
# --------------------------------------------------------------------------
def init_params(key, x_dim=2, y_dim=1, feature_net_dim=32, predictor_net_dim=32):
    def linear(k, fan_in, fan_out):
        kw, kb = jax.random.split(k)
        bound = 1.0 / jnp.sqrt(jnp.float32(fan_in))
        w = jax.random.uniform(kw, (fan_out, fan_in), jnp.float32, -bound, bound)
        b = jax.random.uniform(kb, (fan_out,), jnp.float32, -bound, bound)
        return w, b

    F, H = feature_net_dim, predictor_net_dim
    ks = jax.random.split(key, 7)
    return {
        "fc1_x": linear(ks[0], x_dim, F),
        "fc2_x": linear(ks[1], F, F),
        "fc1_y": linear(ks[2], y_dim, H),        # y_dim must be 1 (forward reshapes y to (*, 1))
        "fc1_xy": linear(ks[3], F + H, H),       # columns [0:F] -> x_feature, [F:] -> y_feature
        "fc2_xy": linear(ks[4], H, H),
        "fc3_xy": linear(ks[5], H, H),
        "fc4_xy": linear(ks[6], H, 1),
    }


# --------------------------------------------------------------------------
# Forward wrapper.
# --------------------------------------------------------------------------
@functools.partial(jax.jit, static_argnames=("sample_tile", "batch_tile"))
def arxnet_forward(params, x, y, sample_tile=2048, batch_tile=256):
    """Pallas implementation of ARXnet.forward.

    x: (B, x_dim) float32
    y: (B, S) float32 (or (B,), treated as (B, 1))
    returns (B, S) float32 score.
    """
    x = x.reshape(x.shape[0], -1).astype(jnp.float32)
    if y.ndim == 1:
        y = y.reshape(-1, 1)
    y = y.astype(jnp.float32)
    B, S = y.shape
    x_dim = x.shape[1]

    w1x, b1x = params["fc1_x"]      # (F, x_dim), (F,)
    w2x, b2x = params["fc2_x"]      # (F, F), (F,)
    w1y, b1y = params["fc1_y"]      # (H, 1), (H,)
    w1, b1 = params["fc1_xy"]       # (H, F+H), (H,)
    w2, b2 = params["fc2_xy"]       # (H, H), (H,)
    w3, b3 = params["fc3_xy"]       # (H, H), (H,)
    w4, b4 = params["fc4_xy"]       # (1, H), (1,)
    F = w1x.shape[0]
    H = w1y.shape[0]

    # ---------------- Stage 1: x -> x_proj (B, H) ----------------
    TB = min(batch_tile, _round_up(B, 8))
    B_pad = _round_up(B, TB)
    x_p = x if B_pad == B else jnp.pad(x, ((0, B_pad - B), (0, 0)))

    w1x_t = w1x.T                   # (x_dim, F)
    w2x_t = w2x.T                   # (F, F)
    wxy_x_t = w1[:, :F].T           # (F, H)   x_feature part of fc1_xy
    b1x_r = b1x.reshape(1, F)
    b2x_r = b2x.reshape(1, F)
    b1_r = b1.reshape(1, H)         # fc1_xy bias folded into x_proj

    full2 = lambda shape: pl.BlockSpec(shape, lambda i: (0, 0))
    x_proj = pl.pallas_call(
        _feature_kernel,
        out_shape=jax.ShapeDtypeStruct((B_pad, H), jnp.float32),
        grid_spec=pltpu.PrefetchScalarGridSpec(
            num_scalar_prefetch=0,
            grid=(B_pad // TB,),
            in_specs=[
                pl.BlockSpec((TB, x_dim), lambda i: (i, 0)),   # x rows
                full2((x_dim, F)), full2((1, F)),              # fc1_x
                full2((F, F)), full2((1, F)),                  # fc2_x
                full2((F, H)), full2((1, H)),                  # fc1_xy x-part + bias
            ],
            out_specs=pl.BlockSpec((TB, H), lambda i: (i, 0)),
        ),
        compiler_params=pltpu.CompilerParams(dimension_semantics=("parallel",)),
    )(x_p, w1x_t, b1x_r, w2x_t, b2x_r, wxy_x_t, b1_r)

    # ---------------- Stage 2: (x_proj, y) -> score (B, S) ----------------
    TS = min(sample_tile, _round_up(S, 128))      # lane-dense sample tile
    S_pad = _round_up(S, TS)
    y_p = y if S_pad == S else jnp.pad(y, ((0, 0), (0, S_pad - S)))
    y_3d = y_p.reshape(B, 1, S_pad)
    xproj_3d = x_proj[:B].reshape(B, H, 1)        # per-batch (H, 1) column

    w1f = w1[:, F:]                 # (H, H) y_feature part, (out, in) as in PyTorch
    w1y_c = w1y.reshape(H, 1)
    b1y_c = b1y.reshape(H, 1)
    b2_c = b2.reshape(H, 1)
    b3_c = b3.reshape(H, 1)
    b4_c = b4.reshape(1, 1)

    full = lambda shape: pl.BlockSpec(shape, lambda b, s: (0, 0))
    out = pl.pallas_call(
        _score_kernel,
        out_shape=jax.ShapeDtypeStruct((B, 1, S_pad), jnp.float32),
        grid_spec=pltpu.PrefetchScalarGridSpec(
            num_scalar_prefetch=0,
            grid=(B, S_pad // TS),
            in_specs=[
                pl.BlockSpec((1, H, 1), lambda b, s: (b, 0, 0)),    # x_proj column (batch-indexed only)
                pl.BlockSpec((1, 1, TS), lambda b, s: (b, 0, s)),   # y samples
                full((H, 1)),   # w1y
                full((H, 1)),   # b1y
                full((H, H)),   # w1f
                full((H, H)),   # w2
                full((H, 1)),   # b2
                full((H, H)),   # w3
                full((H, 1)),   # b3
                full((1, H)),   # w4
                full((1, 1)),   # b4
            ],
            out_specs=pl.BlockSpec((1, 1, TS), lambda b, s: (b, 0, s)),
        ),
        compiler_params=pltpu.CompilerParams(
            dimension_semantics=("parallel", "parallel")),
    )(xproj_3d, y_3d, w1y_c, b1y_c, w1f, w2, b2_c, w3, b3_c, w4, b4_c)

    return out.reshape(B, S_pad)[:, :S]


# --------------------------------------------------------------------------
# Pure-JAX reference mirroring the PyTorch ARXnet forward exactly.
# --------------------------------------------------------------------------
def _reference_forward(params, x, y):
    x = x.reshape(x.shape[0], -1).astype(jnp.float32)
    if y.ndim == 1:
        y = y.reshape(-1, 1)
    y = y.astype(jnp.float32)
    B, S = y.shape

    def lin(p, v):
        w, b = p
        return v @ w.T + b

    xf = jax.nn.relu(lin(params["fc1_x"], x))
    xf = jax.nn.relu(lin(params["fc2_x"], xf))
    xf = jnp.broadcast_to(xf[:, None, :], (B, S, xf.shape[-1])).reshape(B * S, -1)
    yf = y.reshape(B * S, 1)
    y_feature = jnp.tanh(lin(params["fc1_y"], yf))
    xy = jnp.concatenate([xf, y_feature], axis=1)
    xy = jnp.tanh(lin(params["fc1_xy"], xy))
    xy = jnp.tanh(lin(params["fc2_xy"], xy)) + xy
    xy = jnp.tanh(lin(params["fc3_xy"], xy)) + xy
    score = lin(params["fc4_xy"], xy)
    return score.reshape(B, S)


if __name__ == "__main__":
    # Small shapes implied by the forward pass:
    #   x: (batch, x_dim), y: (batch, num_samples), hidden dims = 32.
    batch = 2
    num_samples = 8
    x_dim = 2
    feature_net_dim = 32
    predictor_net_dim = 32

    key = jax.random.PRNGKey(0)
    kp, kx, ky = jax.random.split(key, 3)

    params = init_params(kp, x_dim, 1, feature_net_dim, predictor_net_dim)
    x = jax.random.normal(kx, (batch, x_dim), jnp.float32)
    y = jax.random.normal(ky, (batch, num_samples), jnp.float32)

    score = arxnet_forward(params, x, y)
    score = jax.block_until_ready(score)

    ref = _reference_forward(params, x, y)
    assert score.shape == (batch, num_samples)
    assert jnp.allclose(score, ref, atol=1e-5, rtol=1e-5), (
        "Pallas output mismatch vs reference"
    )
    print("KERNEL_OK")
</pallas_src>

<mosaic_0001>
module attributes {stable_mosaic.version = 11 : i64} {
  func.func @_feature_kernel(%arg0: i32, %arg1: memref<8x2xf32, #tpu.memory_space<vmem>>, %arg2: memref<2x32xf32, #tpu.memory_space<vmem>>, %arg3: memref<1x32xf32, #tpu.memory_space<vmem>>, %arg4: memref<32x32xf32, #tpu.memory_space<vmem>>, %arg5: memref<1x32xf32, #tpu.memory_space<vmem>>, %arg6: memref<32x32xf32, #tpu.memory_space<vmem>>, %arg7: memref<1x32xf32, #tpu.memory_space<vmem>>, %arg8: memref<8x32xf32, #tpu.memory_space<vmem>>) attributes {dimension_semantics = [#tpu.dimension_semantics<parallel>], iteration_bounds = array<i64: 1>, scalar_prefetch = 0 : i64, scratch_operands = 0 : i64, tpu.core_type = #tpu.core_type<tc>, window_params = [{transform_indices = @transform_0, window_bounds = array<i64: 8, 2>}, {pipeline_mode = #tpu.pipeline_mode<synchronous>, transform_indices = @transform_1, window_bounds = array<i64: 2, 32>}, {pipeline_mode = #tpu.pipeline_mode<synchronous>, transform_indices = @transform_2, window_bounds = array<i64: 1, 32>}, {pipeline_mode = #tpu.pipeline_mode<synchronous>, transform_indices = @transform_3, window_bounds = array<i64: 32, 32>}, {pipeline_mode = #tpu.pipeline_mode<synchronous>, transform_indices = @transform_4, window_bounds = array<i64: 1, 32>}, {pipeline_mode = #tpu.pipeline_mode<synchronous>, transform_indices = @transform_5, window_bounds = array<i64: 32, 32>}, {pipeline_mode = #tpu.pipeline_mode<synchronous>, transform_indices = @transform_6, window_bounds = array<i64: 1, 32>}, {transform_indices = @transform_7, window_bounds = array<i64: 8, 32>}]} {
    %c0 = arith.constant 0 : index
    %c0_0 = arith.constant 0 : index
    %0 = vector.load %arg1[%c0, %c0_0] : memref<8x2xf32, #tpu.memory_space<vmem>>, vector<8x2xf32>
    %c0_1 = arith.constant 0 : index
    %c0_2 = arith.constant 0 : index
    %1 = vector.load %arg2[%c0_1, %c0_2] : memref<2x32xf32, #tpu.memory_space<vmem>>, vector<2x32xf32>
    %cst = arith.constant dense<0.000000e+00> : vector<8x32xf32>
    %2 = tpu.matmul %0, %1, %cst {dimension_numbers = #tpu.dot_dimension_numbers<[1], [0], [0], [1], [0, 0, 1, 1], [], []>} : vector<8x2xf32>, vector<2x32xf32>, vector<8x32xf32> -> vector<8x32xf32>
    %c0_3 = arith.constant 0 : index
    %c0_4 = arith.constant 0 : index
    %3 = vector.load %arg3[%c0_3, %c0_4] : memref<1x32xf32, #tpu.memory_space<vmem>>, vector<1x32xf32>
    %4 = vector.broadcast %3 : vector<1x32xf32> to vector<8x32xf32>
    %5 = arith.addf %2, %4 : vector<8x32xf32>
    %cst_5 = arith.constant 0.000000e+00 : f32
    %6 = vector.broadcast %cst_5 : f32 to vector<8x32xf32>
    %7 = arith.maximumf %5, %6 : vector<8x32xf32>
    %c0_6 = arith.constant 0 : index
    %c0_7 = arith.constant 0 : index
    %8 = vector.load %arg4[%c0_6, %c0_7] : memref<32x32xf32, #tpu.memory_space<vmem>>, vector<32x32xf32>
    %cst_8 = arith.constant dense<0.000000e+00> : vector<8x32xf32>
    %9 = tpu.matmul %7, %8, %cst_8 {dimension_numbers = #tpu.dot_dimension_numbers<[1], [0], [0], [1], [0, 0, 1, 1], [], []>} : vector<8x32xf32>, vector<32x32xf32>, vector<8x32xf32> -> vector<8x32xf32>
    %c0_9 = arith.constant 0 : index
    %c0_10 = arith.constant 0 : index
    %10 = vector.load %arg5[%c0_9, %c0_10] : memref<1x32xf32, #tpu.memory_space<vmem>>, vector<1x32xf32>
    %11 = vector.broadcast %10 : vector<1x32xf32> to vector<8x32xf32>
    %12 = arith.addf %9, %11 : vector<8x32xf32>
    %cst_11 = arith.constant 0.000000e+00 : f32
    %13 = vector.broadcast %cst_11 : f32 to vector<8x32xf32>
    %14 = arith.maximumf %12, %13 : vector<8x32xf32>
    %c0_12 = arith.constant 0 : index
    %c0_13 = arith.constant 0 : index
    %15 = vector.load %arg6[%c0_12, %c0_13] : memref<32x32xf32, #tpu.memory_space<vmem>>, vector<32x32xf32>
    %cst_14 = arith.constant dense<0.000000e+00> : vector<8x32xf32>
    %16 = tpu.matmul %14, %15, %cst_14 {dimension_numbers = #tpu.dot_dimension_numbers<[1], [0], [0], [1], [0, 0, 1, 1], [], []>} : vector<8x32xf32>, vector<32x32xf32>, vector<8x32xf32> -> vector<8x32xf32>
    %c0_15 = arith.constant 0 : index
    %c0_16 = arith.constant 0 : index
    %17 = vector.load %arg7[%c0_15, %c0_16] : memref<1x32xf32, #tpu.memory_space<vmem>>, vector<1x32xf32>
    %18 = vector.broadcast %17 : vector<1x32xf32> to vector<8x32xf32>
    %19 = arith.addf %16, %18 : vector<8x32xf32>
    %c0_17 = arith.constant 0 : index
    %c0_18 = arith.constant 0 : index
    %20 = vector.load %arg8[%c0_17, %c0_18] : memref<8x32xf32, #tpu.memory_space<vmem>>, vector<8x32xf32>
    tpu.vector_store %arg8[%c0_17, %c0_18], %19 {strides = array<i32>} : memref<8x32xf32, #tpu.memory_space<vmem>>, vector<8x32xf32>,
    return
  }
  func.func @transform_0(%arg0: i32) -> (i32, i32) {
    %c0_i32 = arith.constant 0 : i32
    %c0_i32_0 = arith.constant 0 : i32
    return %arg0, %c0_i32 : i32, i32
  }
  func.func @transform_1(%arg0: i32) -> (i32, i32) {
    %c0_i32 = arith.constant 0 : i32
    %c0_i32_0 = arith.constant 0 : i32
    %c0_i32_1 = arith.constant 0 : i32
    return %c0_i32, %c0_i32_0 : i32, i32
  }
  func.func @transform_2(%arg0: i32) -> (i32, i32) {
    %c0_i32 = arith.constant 0 : i32
    %c0_i32_0 = arith.constant 0 : i32
    %c0_i32_1 = arith.constant 0 : i32
    return %c0_i32, %c0_i32_0 : i32, i32
  }
  func.func @transform_3(%arg0: i32) -> (i32, i32) {
    %c0_i32 = arith.constant 0 : i32
    %c0_i32_0 = arith.constant 0 : i32
    %c0_i32_1 = arith.constant 0 : i32
    return %c0_i32, %c0_i32_0 : i32, i32
  }
  func.func @transform_4(%arg0: i32) -> (i32, i32) {
    %c0_i32 = arith.constant 0 : i32
    %c0_i32_0 = arith.constant 0 : i32
    %c0_i32_1 = arith.constant 0 : i32
    return %c0_i32, %c0_i32_0 : i32, i32
  }
  func.func @transform_5(%arg0: i32) -> (i32, i32) {
    %c0_i32 = arith.constant 0 : i32
    %c0_i32_0 = arith.constant 0 : i32
    %c0_i32_1 = arith.constant 0 : i32
    return %c0_i32, %c0_i32_0 : i32, i32
  }
  func.func @transform_6(%arg0: i32) -> (i32, i32) {
    %c0_i32 = arith.constant 0 : i32
    %c0_i32_0 = arith.constant 0 : i32
    %c0_i32_1 = arith.constant 0 : i32
    return %c0_i32, %c0_i32_0 : i32, i32
  }
  func.func @transform_7(%arg0: i32) -> (i32, i32) {
    %c0_i32 = arith.constant 0 : i32
    %c0_i32_0 = arith.constant 0 : i32
    return %arg0, %c0_i32 : i32, i32
  }
}

module attributes {stable_mosaic.version = 11 : i64} {
  func.func @_score_kernel(%arg0: i32, %arg1: i32, %arg2: memref<1x32x1xf32, #tpu.memory_space<vmem>>, %arg3: memref<1x1x128xf32, #tpu.memory_space<vmem>>, %arg4: memref<32x1xf32, #tpu.memory_space<vmem>>, %arg5: memref<32x1xf32, #tpu.memory_space<vmem>>, %arg6: memref<32x32xf32, #tpu.memory_space<vmem>>, %arg7: memref<32x32xf32, #tpu.memory_space<vmem>>, %arg8: memref<32x1xf32, #tpu.memory_space<vmem>>, %arg9: memref<32x32xf32, #tpu.memory_space<vmem>>, %arg10: memref<32x1xf32, #tpu.memory_space<vmem>>, %arg11: memref<1x32xf32, #tpu.memory_space<vmem>>, %arg12: memref<1x1xf32, #tpu.memory_space<vmem>>, %arg13: memref<1x1x128xf32, #tpu.memory_space<vmem>>) attributes {dimension_semantics = [#tpu.dimension_semantics<parallel>, #tpu.dimension_semantics<parallel>], iteration_bounds = array<i64: 2, 1>, scalar_prefetch = 0 : i64, scratch_operands = 0 : i64, tpu.core_type = #tpu.core_type<tc>, window_params = [{transform_indices = @transform_0, window_bounds = array<i64: 1, 32, 1>}, {transform_indices = @transform_1, window_bounds = array<i64: 1, 1, 128>}, {pipeline_mode = #tpu.pipeline_mode<synchronous>, transform_indices = @transform_2, window_bounds = array<i64: 32, 1>}, {pipeline_mode = #tpu.pipeline_mode<synchronous>, transform_indices = @transform_3, window_bounds = array<i64: 32, 1>}, {pipeline_mode = #tpu.pipeline_mode<synchronous>, transform_indices = @transform_4, window_bounds = array<i64: 32, 32>}, {pipeline_mode = #tpu.pipeline_mode<synchronous>, transform_indices = @transform_5, window_bounds = array<i64: 32, 32>}, {pipeline_mode = #tpu.pipeline_mode<synchronous>, transform_indices = @transform_6, window_bounds = array<i64: 32, 1>}, {pipeline_mode = #tpu.pipeline_mode<synchronous>, transform_indices = @transform_7, window_bounds = array<i64: 32, 32>}, {pipeline_mode = #tpu.pipeline_mode<synchronous>, transform_indices = @transform_8, window_bounds = array<i64: 32, 1>}, {pipeline_mode = #tpu.pipeline_mode<synchronous>, transform_indices = @transform_9, window_bounds = array<i64: 1, 32>}, {pipeline_mode = #tpu.pipeline_mode<synchronous>, transform_indices = @transform_10, window_bounds = array<i64: 1, 1>}, {transform_indices = @transform_11, window_bounds = array<i64: 1, 1, 128>}]} {
    %c0 = arith.constant 0 : index
    %c0_0 = arith.constant 0 : index
    %c0_1 = arith.constant 0 : index
    %0 = vector.load %arg2[%c0, %c0_0, %c0_1] : memref<1x32x1xf32, #tpu.memory_space<vmem>>, vector<1x32x1xf32>
    %1 = vector.shape_cast %0 : vector<1x32x1xf32> to vector<32x1xf32>
    %c0_2 = arith.constant 0 : index
    %c0_3 = arith.constant 0 : index
    %c0_4 = arith.constant 0 : index
    %2 = vector.load %arg3[%c0_2, %c0_3, %c0_4] : memref<1x1x128xf32, #tpu.memory_space<vmem>>, vector<1x1x128xf32>
    %3 = vector.shape_cast %2 : vector<1x1x128xf32> to vector<1x128xf32>
    %c0_5 = arith.constant 0 : index
    %c0_6 = arith.constant 0 : index
    %4 = vector.load %arg4[%c0_5, %c0_6] : memref<32x1xf32, #tpu.memory_space<vmem>>, vector<32x1xf32>
    %5 = vector.broadcast %4 : vector<32x1xf32> to vector<32x128xf32>
    %6 = vector.broadcast %3 : vector<1x128xf32> to vector<32x128xf32>
    %7 = arith.mulf %5, %6 : vector<32x128xf32>
    %c0_7 = arith.constant 0 : index
    %c0_8 = arith.constant 0 : index
    %8 = vector.load %arg5[%c0_7, %c0_8] : memref<32x1xf32, #tpu.memory_space<vmem>>, vector<32x1xf32>
    %9 = vector.broadcast %8 : vector<32x1xf32> to vector<32x128xf32>
    %10 = arith.addf %7, %9 : vector<32x128xf32>
    %11 = math.tanh %10 : vector<32x128xf32>
    %c0_9 = arith.constant 0 : index
    %c0_10 = arith.constant 0 : index
    %12 = vector.load %arg6[%c0_9, %c0_10] : memref<32x32xf32, #tpu.memory_space<vmem>>, vector<32x32xf32>
    %cst = arith.constant dense<0.000000e+00> : vector<32x128xf32>
    %13 = tpu.matmul %12, %11, %cst {dimension_numbers = #tpu.dot_dimension_numbers<[1], [0], [0], [1], [0, 0, 1, 1], [], []>} : vector<32x32xf32>, vector<32x128xf32>, vector<32x128xf32> -> vector<32x128xf32>
    %14 = vector.broadcast %1 : vector<32x1xf32> to vector<32x128xf32>
    %15 = arith.addf %14, %13 : vector<32x128xf32>
    %16 = math.tanh %15 : vector<32x128xf32>
    %c0_11 = arith.constant 0 : index
    %c0_12 = arith.constant 0 : index
    %17 = vector.load %arg7[%c0_11, %c0_12] : memref<32x32xf32, #tpu.memory_space<vmem>>, vector<32x32xf32>
    %cst_13 = arith.constant dense<0.000000e+00> : vector<32x128xf32>
    %18 = tpu.matmul %17, %16, %cst_13 {dimension_numbers = #tpu.dot_dimension_numbers<[1], [0], [0], [1], [0, 0, 1, 1], [], []>} : vector<32x32xf32>, vector<32x128xf32>, vector<32x128xf32> -> vector<32x128xf32>
    %c0_14 = arith.constant 0 : index
    %c0_15 = arith.constant 0 : index
    %19 = vector.load %arg8[%c0_14, %c0_15] : memref<32x1xf32, #tpu.memory_space<vmem>>, vector<32x1xf32>
    %20 = vector.broadcast %19 : vector<32x1xf32> to vector<32x128xf32>
    %21 = arith.addf %18, %20 : vector<32x128xf32>
    %22 = math.tanh %21 : vector<32x128xf32>
    %23 = arith.addf %22, %16 : vector<32x128xf32>
    %c0_16 = arith.constant 0 : index
    %c0_17 = arith.constant 0 : index
    %24 = vector.load %arg9[%c0_16, %c0_17] : memref<32x32xf32, #tpu.memory_space<vmem>>, vector<32x32xf32>
    %cst_18 = arith.constant dense<0.000000e+00> : vector<32x128xf32>
    %25 = tpu.matmul %24, %23, %cst_18 {dimension_numbers = #tpu.dot_dimension_numbers<[1], [0], [0], [1], [0, 0, 1, 1], [], []>} : vector<32x32xf32>, vector<32x128xf32>, vector<32x128xf32> -> vector<32x128xf32>
    %c0_19 = arith.constant 0 : index
    %c0_20 = arith.constant 0 : index
    %26 = vector.load %arg10[%c0_19, %c0_20] : memref<32x1xf32, #tpu.memory_space<vmem>>, vector<32x1xf32>
    %27 = vector.broadcast %26 : vector<32x1xf32> to vector<32x128xf32>
    %28 = arith.addf %25, %27 : vector<32x128xf32>
    %29 = math.tanh %28 : vector<32x128xf32>
    %30 = arith.addf %29, %23 : vector<32x128xf32>
    %c0_21 = arith.constant 0 : index
    %c0_22 = arith.constant 0 : index
    %31 = vector.load %arg11[%c0_21, %c0_22] : memref<1x32xf32, #tpu.memory_space<vmem>>, vector<1x32xf32>
    %cst_23 = arith.constant dense<0.000000e+00> : vector<1x128xf32>
    %32 = tpu.matmul %31, %30, %cst_23 {dimension_numbers = #tpu.dot_dimension_numbers<[1], [0], [0], [1], [0, 0, 1, 1], [], []>} : vector<1x32xf32>, vector<32x128xf32>, vector<1x128xf32> -> vector<1x128xf32>
    %c0_24 = arith.constant 0 : index
    %c0_25 = arith.constant 0 : index
    %33 = vector.load %arg12[%c0_24, %c0_25] : memref<1x1xf32, #tpu.memory_space<vmem>>, vector<1x1xf32>
    %34 = vector.broadcast %33 : vector<1x1xf32> to vector<1x128xf32>
    %35 = arith.addf %32, %34 : vector<1x128xf32>
    %c0_26 = arith.constant 0 : index
    %c0_27 = arith.constant 0 : index
    %c0_28 = arith.constant 0 : index
    %36 = vector.load %arg13[%c0_26, %c0_27, %c0_28] : memref<1x1x128xf32, #tpu.memory_space<vmem>>, vector<1x1x128xf32>
    %37 = vector.shape_cast %36 : vector<1x1x128xf32> to vector<1x128xf32>
    %38 = vector.shape_cast %35 : vector<1x128xf32> to vector<1x1x128xf32>
    tpu.vector_store %arg13[%c0_26, %c0_27, %c0_28], %38 {strides = array<i32>} : memref<1x1x128xf32, #tpu.memory_space<vmem>>, vector<1x1x128xf32>,
    return
  }
  func.func @transform_0(%arg0: i32, %arg1: i32) -> (i32, i32, i32) {
    %c0_i32 = arith.constant 0 : i32
    %c0_i32_0 = arith.constant 0 : i32
    %c0_i32_1 = arith.constant 0 : i32
    return %arg0, %c0_i32, %c0_i32_0 : i32, i32, i32
  }
  func.func @transform_1(%arg0: i32, %arg1: i32) -> (i32, i32, i32) {
    %c0_i32 = arith.constant 0 : i32
    %c0_i32_0 = arith.constant 0 : i32
    return %arg0, %c0_i32, %arg1 : i32, i32, i32
  }
  func.func @transform_2(%arg0: i32, %arg1: i32) -> (i32, i32) {
    %c0_i32 = arith.constant 0 : i32
    %c0_i32_0 = arith.constant 0 : i32
    %c0_i32_1 = arith.constant 0 : i32
    return %c0_i32, %c0_i32_0 : i32, i32
  }
  func.func @transform_3(%arg0: i32, %arg1: i32) -> (i32, i32) {
    %c0_i32 = arith.constant 0 : i32
    %c0_i32_0 = arith.constant 0 : i32
    %c0_i32_1 = arith.constant 0 : i32
    return %c0_i32, %c0_i32_0 : i32, i32
  }
  func.func @transform_4(%arg0: i32, %arg1: i32) -> (i32, i32) {
    %c0_i32 = arith.constant 0 : i32
    %c0_i32_0 = arith.constant 0 : i32
    %c0_i32_1 = arith.constant 0 : i32
    return %c0_i32, %c0_i32_0 : i32, i32
  }
  func.func @transform_5(%arg0: i32, %arg1: i32) -> (i32, i32) {
    %c0_i32 = arith.constant 0 : i32
    %c0_i32_0 = arith.constant 0 : i32
    %c0_i32_1 = arith.constant 0 : i32
    return %c0_i32, %c0_i32_0 : i32, i32
  }
  func.func @transform_6(%arg0: i32, %arg1: i32) -> (i32, i32) {
    %c0_i32 = arith.constant 0 : i32
    %c0_i32_0 = arith.constant 0 : i32
    %c0_i32_1 = arith.constant 0 : i32
    return %c0_i32, %c0_i32_0 : i32, i32
  }
  func.func @transform_7(%arg0: i32, %arg1: i32) -> (i32, i32) {
    %c0_i32 = arith.constant 0 : i32
    %c0_i32_0 = arith.constant 0 : i32
    %c0_i32_1 = arith.constant 0 : i32
    return %c0_i32, %c0_i32_0 : i32, i32
  }
  func.func @transform_8(%arg0: i32, %arg1: i32) -> (i32, i32) {
    %c0_i32 = arith.constant 0 : i32
    %c0_i32_0 = arith.constant 0 : i32
    %c0_i32_1 = arith.constant 0 : i32
    return %c0_i32, %c0_i32_0 : i32, i32
  }
  func.func @transform_9(%arg0: i32, %arg1: i32) -> (i32, i32) {
    %c0_i32 = arith.constant 0 : i32
    %c0_i32_0 = arith.constant 0 : i32
    %c0_i32_1 = arith.constant 0 : i32
    return %c0_i32, %c0_i32_0 : i32, i32
  }
  func.func @transform_10(%arg0: i32, %arg1: i32) -> (i32, i32) {
    %c0_i32 = arith.constant 0 : i32
    %c0_i32_0 = arith.constant 0 : i32
    %c0_i32_1 = arith.constant 0 : i32
    return %c0_i32, %c0_i32_0 : i32, i32
  }
  func.func @transform_11(%arg0: i32, %arg1: i32) -> (i32, i32, i32) {
    %c0_i32 = arith.constant 0 : i32
    %c0_i32_0 = arith.constant 0 : i32
    return %arg0, %c0_i32, %arg1 : i32, i32, i32
  }
}

</mosaic_0001>

<bundles_post_ra>
// kernel: arxnet_forward.2
= control target key start
LH: loop header
LB: loop body
LE: loop exit
PB: predicated region body
PF: predicated region fallthrough
CT: control target
= control target key end

     0   :  { %vm39_vm0 = vcmask 1041408   ;;  %vm35_vm1 = vcmask 15360   ;;  %v337_v0 = vmov 0.0   ;;  %vm338_vm2 = vmmov 0   ;;  %s424_s1 = inlined_call_operand.vmem [shape: f32[2,32], index: 1, kind: input, shape index: {}]   ;;  %s425_s0 = inlined_call_operand.vmem [shape: f32[8,2], index: 0, kind: input, shape index: {}]   ;;  %s426_s3 = inlined_call_operand.vmem [shape: f32[32,32], index: 3, kind: input, shape index: {}]   ;;  %s427_s5 = inlined_call_operand.vmem [shape: f32[32,32], index: 5, kind: input, shape index: {}]   ;;  %s428_s2 = inlined_call_operand.vmem [shape: f32[1,32], index: 2, kind: input, shape index: {}]   ;;  %s429_s4 = inlined_call_operand.vmem [shape: f32[1,32], index: 4, kind: input, shape index: {}]   ;;  %s430_s6 = inlined_call_operand.vmem [shape: f32[1,32], index: 6, kind: input, shape index: {}]   ;;  %s431_s7 = inlined_call_operand.vmem [shape: f32[8,32], index: 7, kind: output, shape index: {}]  }
   0x1   :  { %308 = vmatprep.subr.mxu0 %v337_v0  ;;  %v27_v1 = vld [vmem:[%s424_s1] sm:$0x3]  ;;  %310 = vmatprep.mubr.msk.f32.mxu0 %vm338_vm2, %v337_v0  ;;  %v117_v3 = vld [vmem:[%s426_s3 + $0x18] sm:$0xff]  ;;  %v116_v4 = vld [vmem:[%s426_s3 + $0x10] sm:$0xff]  ;;  %vm125_vm3 = vcmask 261120  }
   0x2   :  { %v26_v2 = vld [vmem:[%s425_s0] sm:$0xff]  ;;  %309 = vmatpush3.msk.msra.mxu0 %vm39_vm0, %v27_v1  ;;  %313 = vmatprep.subr.mxu1 %v337_v0  ;;  %v115_v5 = vld [vmem:[%s426_s3 + $0x8] sm:$0xff]  ;;  %v203_v7 = vld [vmem:[%s427_s5 + $0x18] sm:$0xff] }
   0x3   :  { %311 = vmatmul.mubr.msk.f32.vlgmr.msra.gmra.mxu0 %vm35_vm1, %v26_v2  ;;  %314 = vmatpush3.msra.mxu1 %v117_v3  ;;  %v114_v6 = vld [vmem:[%s426_s3] sm:$0xff]  ;;  %v202_v13 = vld [vmem:[%s427_s5 + $0x10] sm:$0xff]  ;;  %v201_v14 = vld [vmem:[%s427_s5 + $0x8] sm:$0xff] }
   0x4   :  { %315 = vmatprep.subr.mxu1 %v337_v0  ;;  %321 = vmatprep.mubr.msk.f32.mxu1 %vm338_vm2, %v337_v0  ;;  %v289_v8 = vld [vmem:[%s428_s2] ss:$0 sm:$0xff] }
   0x5   :  { %324 = vmatprep.subr.mxu0 %v337_v0  ;;  %332 = vmatprep.mubr.msk.f32.mxu0 %vm338_vm2, %v337_v0  ;;  %v200_v15 = vld [vmem:[%s427_s5] sm:$0xff] }
   0x6   :  { %316 = vmatpush3.msra.mxu1 %v116_v4  ;;  %325 = vmatpush3.msra.mxu0 %v203_v7  ;;  %v292_v16 = vld [vmem:[%s429_s4] ss:$0 sm:$0xff] }
   0x7   :  { %317 = vmatprep.subr.mxu1 %v337_v0  ;;  %326 = vmatprep.subr.mxu0 %v337_v0  ;;  %v294_v21 = vld [vmem:[%s430_s6] ss:$0 sm:$0xff] }
   0x8   :  { %318 = vmatpush3.msra.mxu1 %v115_v5  ;;  %327 = vmatpush3.msra.mxu0 %v202_v13 }
   0x9   :  { %319 = vmatprep.subr.mxu1 %v337_v0  ;;  %328 = vmatprep.subr.mxu0 %v337_v0 }
   0xa   :  { %320 = vmatpush3.msra.mxu1 %v114_v6  ;;  %329 = vmatpush3.msra.mxu0 %v201_v14 }
   0xb   :  { %330 = vmatprep.subr.mxu0 %v337_v0 }
   0xc   :  { %331 = vmatpush3.msra.mxu0 %v200_v15 }
  0xc3   :  { %v109_v9 = vpop.f32.mrf.mxu0 }
  0xc4   :  { %v110_v10 = vadd.f32 %v289_v8, %v109_v9 }
  0xc5   :  { %v312_v11 = vpop.f32.mrf.mxu0 }
  0xc6   :  { %v113_v12 = vmax.f32 %v110_v10, 0.0 }
  0xc8   :  { %322 = vmatmul.mubr.msk.f32.vlgmr.msra.gmra.mxu1 %vm125_vm3, %v113_v12 }
 0x188   :  { %v195_v17 = vpop.f32.mrf.mxu1 }
 0x189   :  { %v196_v18 = vadd.f32 %v292_v16, %v195_v17 }
 0x18a   :  { %v323_v19 = vpop.f32.mrf.mxu1 }
 0x18b   :  { %v199_v20 = vmax.f32 %v196_v18, 0.0 }
 0x18d   :  { %333 = vmatmul.mubr.msk.f32.vlgmr.msra.gmra.mxu0 %vm125_vm3, %v199_v20 }
 0x24d   :  { %v280_v22 = vpop.f32.mrf.mxu0 }
 0x24e   :  { %v281_v23 = vadd.f32 %v294_v21, %v280_v22 }
 0x24f   :  { %v334_v24 = vpop.f32.mrf.mxu0 }
 0x250   :  { %284 = vst.msk [vmem:[%s431_s7] sm:$0xff] %vm125_vm3, %v281_v23 }

// kernel: arxnet_forward.3
= control target key start
LH: loop header
LB: loop body
LE: loop exit
PB: predicated region body
PF: predicated region fallthrough
CT: control target
= control target key end

     0   :  { %s1623_s0 = inlined_call_operand.vmem [shape: f32[2,32,1], index: 0, kind: input, shape index: {}]   ;;  %s1624_s1 = inlined_call_operand.vmem [shape: f32[2,1,128], index: 1, kind: input, shape index: {}]   ;;  %s1625_s2 = inlined_call_operand.vmem [shape: f32[32,1], index: 2, kind: input, shape index: {}]   ;;  %s1626_s3 = inlined_call_operand.vmem [shape: f32[32,1], index: 3, kind: input, shape index: {}]   ;;  %s1627_s4 = inlined_call_operand.vmem [shape: f32[32,32], index: 4, kind: input, shape index: {}]   ;;  %s1628_s5 = inlined_call_operand.vmem [shape: f32[32,32], index: 5, kind: input, shape index: {}]   ;;  %s1629_s6 = inlined_call_operand.vmem [shape: f32[32,1], index: 6, kind: input, shape index: {}]   ;;  %s1630_s7 = inlined_call_operand.vmem [shape: f32[32,32], index: 7, kind: input, shape index: {}]   ;;  %s1631_s8 = inlined_call_operand.vmem [shape: f32[32,1], index: 8, kind: input, shape index: {}]   ;;  %s1632_s9 = inlined_call_operand.vmem [shape: f32[1,32], index: 9, kind: input, shape index: {}]   ;;  %s1633_s10 = inlined_call_operand.<no memory space> [shape: f32[1,1], index: 10, kind: input, shape index: {}]   ;;  %s1634_s11 = inlined_call_operand.hbm [shape: f32[2,1,128], index: 11, kind: output, shape index: {}]  }
   0x1   :  { %v16_v0 = vstv %s1633_s10 }
   0x2   :  { %17 = vst [vmem:[#allocation2] sm:$0x1] %v16_v0 }
   0x3   :  { %18 = vsyncpa [#allocation4], 0 }
   0x4   :  { %20 = vsyncpa [#allocation4 + $0x1], 0  ;;  %s1411_s19 = smov 0   ;;  %s1413_s20 = smov 0  }
   0x5   :  { %s1415_s21 = smov 0   ;;  %s1417_s22 = smov 0  }
   0x6   :  { %s1419_s23 = smov 0   ;;  %s1421_s24 = smov 0  }
   0x7 LB: > { %1637 = sst [smem:[#allocation6_spill]] %s1338_s23  ;;  %s1067_s10 = sadd.s32 4294967295, %s1342_s24   ;;  %s1342_s24 = sphi %s1421_s24, %s26_s24   ;;  %s1338_s23 = sphi %s1419_s23, %s1642_s23   ;;  %s1334_s22 = sphi %s1417_s22, %s1641_s22   ;;  %s1330_s21 = sphi %s1415_s21, %s1645_s21   ;;  %s1326_s20 = sphi %s1413_s20, %s1644_s20   ;;  %s1322_s19 = sphi %s1411_s19, %s1643_s19  }
   0x8   : > { %s1068_s25 = sadd.s32 4294967294, %s1342_s24   ;;  %s38_s26 = sadd.s32 1, %s1338_s23 }
   0x9   : > { %s290_s27 = sadd.s32 1, %s1330_s21  ;;  %p40_p0 = scmp.ge.s32.totalorder %s38_s26, 2 }
   0xa   : > { %p300_p1 = scmp.ne.s32.totalorder %s1330_s21, %s1326_s20  ;;  %p301_p2 = scmp.eq.s32.totalorder %s1067_s10, 1 }
   0xb   : > { %p306_p3 = scmp.ne.s32.totalorder %s1326_s20, %s1322_s19  ;;  %s1647_s26 = smov (%p40_p0, %s38_s26), 0 }
   0xc   : > { %1638 = sst [smem:[#allocation7_spill]] %s1647_s26  ;;  %p1451_p4 = por %p301_p2, %p300_p1 }
   0xd   : > { %p307_p5 = scmp.eq.s32.totalorder %s1068_s25, 1  ;;  %s285_s29 = ssub.s32 %s1338_s23, %s1647_s26 }
   0xe   : > { %p1071_p6 = scmp.ge.s32.totalorder %s1342_s24, 1  ;;  %p288_p7 = scmp.eq.s32.totalorder %s285_s29, 0 }
   0xf   : > { %p1458_p8 = por %p307_p5, %p306_p3  ;;  %p369_p9 = scmp.lt.s32.totalorder %s1342_s24, 3 }
  0x10   : > { %s1464_s12 = scalar_select %p288_p7, %s1330_s21, %s290_s27  }
  0x11   : > { %p370_p10 = pnand %p1071_p6, %p369_p9 }
  0x12   : > { %p414_p11 = scmp.lt.s32.totalorder (!%p370_p10), %s1334_s22, 1 }
  0x13   : > { %373 = sbr.rel (%p370_p10) target bundleno = 1056 (0x420), region = 64 }
  0x18   : > { %v467_v1 = vld [vmem:[%s1626_s3 + $0x18] sm:$0xff]  ;;  %v1344_v3 = vmov 0   ;;  %v432_v4 = vld [vmem:[%s1625_s2 + $0x10] sm:$0xff]  ;;  %v431_v5 = vld [vmem:[%s1625_s2 + $0x8] sm:$0xff]  ;;  %s1480_s27 = scalar_select %p414_p11, %s1334_s22, 1  ;;  %vm500_vm0 = vcmask 261120  }
  0x19   : > { %v433_v2 = vld [vmem:[%s1625_s2 + $0x18] sm:$0xff]  ;;  %1233 = vset.pattern.permute.xlu1 %v1344_v3  ;;  %1232 = vset.pattern.permute.xlu0 %v1344_v3  ;;  %v466_v6 = vld [vmem:[%s1626_s3 + $0x10] sm:$0xff]  ;;  %v430_v7 = vld [vmem:[%s1625_s2] sm:$0xff]  ;;  %vm1346_vm1 = vmmov 0  }
  0x1a   : > { %485 = vperm.xlu1 %1233, %v467_v1   ;;  %451 = vperm.xlu0 %1232, %v433_v2   ;;  %s1091_s16 = sshll.u32 %s1480_s27, 5  ;;  %v465_v8 = vld [vmem:[%s1626_s3 + $0x8] sm:$0xff]  ;;  %v464_v9 = vld [vmem:[%s1626_s3] sm:$0xff]  ;;  %v633_v14 = vld [vmem:[%s1629_s6 + $0x18] sm:$0xff]  ;;  %s424_s25 = scalar_lea.vmem %s1624_s1, %s1480_s27 }
  0x1b   : > { %s418_s29 = scalar_lea.vmem %s1623_s0, %s1091_s16  ;;  %v632_v15 = vld [vmem:[%s1629_s6 + $0x10] sm:$0xff]  ;;  %v631_v16 = vld [vmem:[%s1629_s6 + $0x8] sm:$0xff]  ;;  %v630_v17 = vld [vmem:[%s1629_s6] sm:$0xff]  ;;  %s412_s27 = sand.u32 1, %s1326_s20  }
  0x1c   : > { %v428_v10 = vld [vmem:[%s418_s29 + $0x18] sm:$0xff]  ;;  %v427_v11 = vld [vmem:[%s418_s29 + $0x10] sm:$0xff]  ;;  %v426_v12 = vld [vmem:[%s418_s29 + $0x8] sm:$0xff]  ;;  %s413_s13 = scalar_lea.vmem [#allocation3], %s412_s27  ;;  %s978_s26 = scalar_lea.sflag [#allocation4], %s412_s27 }
  0x1d   : > { %v425_v13 = vld [vmem:[%s418_s29] sm:$0xff]  ;;  %v766_v19 = vld [vmem:[%s1631_s8 + $0x18] sm:$0xff]  ;;  %v765_v20 = vld [vmem:[%s1631_s8 + $0x10] sm:$0xff]  ;;  %s1088_s29 = sshll.u32 %s1334_s22, 4  ;;  %s991_s14 = sshll.u32 %s413_s13, 4  ;;  %s992_s14 = int_to_ptr.vmem [resolvable:$true] %s991_s14 }
  0x1e   : > { %446 = vperm.xlu0 %1232, %v432_v4   ;;  %441 = vperm.xlu1 %1233, %v431_v5   ;;  %v496_v18 = vld [vmem:[%s1627_s4] sm:$0xff]  ;;  %v764_v21 = vld [vmem:[%s1631_s8 + $0x8] sm:$0xff]  ;;  %v498_v46 = vld [vmem:[%s1627_s4 + $0x10] sm:$0xff]  ;;  %s1583_s23 = scalar_lea.hbm %s1634_s11, %s1088_s29  ;;  %s1266_s16 = scalar_lea.vmem %s992_s14, 16 }
  0x1f   : > { %1129 = vmatprep.mubr.msk.f32.mxu0 %vm500_vm0, %v496_v18  ;;  %v763_v22 = vld [vmem:[%s1631_s8] sm:$0xff]  ;;  %v497_v45 = vld [vmem:[%s1627_s4 + $0x8] sm:$0xff]  ;;  %v499_v47 = vld [vmem:[%s1627_s4 + $0x18] sm:$0xff]  ;;  %p1267_p12 = scmp.ne.s32.totalorder %s992_s14, %s1266_s16  ;;  %s1347_s22 = smov [#allocation3]  }
  0x20   : > { %v893_v23 = vld [vmem:[#allocation2] sm:$0x1]  ;;  %v627_v1 = vld [vmem:[%s1628_s5 + $0x8] sm:$0xff]  ;;  %v628_v2 = vld [vmem:[%s1628_s5 + $0x10] sm:$0xff]  ;;  %s1270_s18 = sshll.u32 %s1347_s22, 4  ;;  %s1271_s18 = int_to_ptr.vmem [resolvable:$false] %s1270_s18 }
  0x21   : > { %v1074_v24 = vld [vmem:[%s424_s25] ss:$0 sm:$0xff]  ;;  %v629_v3 = vld [vmem:[%s1628_s5 + $0x18] sm:$0xff]  ;;  %p1268_p13 = pnand %p1267_p12, %p1451_p4  ;;  %s1272_s10 = scalar_lea.vmem %s1271_s18, 32 }
  0x22   : > { %480 = vperm.xlu0 %1232, %v466_v6   ;;  %436 = vperm.xlu1 %1233, %v430_v7   ;;  %v626_v48 = vld [vmem:[%s1628_s5] sm:$0xff]  ;;  %p1273_p1 = scmp.lt.s32.totalorder %s992_s14, %s1271_s18  ;;  %p1274_p2 = scmp.lt.s32.totalorder %s1272_s10, %s1266_s16 }
  0x23   : > { %1143 = vmatprep.mubr.msk.f32.mxu1 %vm500_vm0, %v626_v48  ;;  %v759_v4 = vld [vmem:[%s1630_s7] sm:$0xff]  ;;  %p1269_p0 = pneg %p1268_p13 }
  0x24   : > { %p1275_p3 = por %p1274_p2, %p1273_p1 }
  0x26   : > { %475 = vperm.xlu0 %1232, %v465_v8   ;;  %470 = vperm.xlu1 %1233, %v464_v9   ;;  %p1276_p5 = pnand %p1275_p3, %p1269_p0 }
  0x2a   : > { %615 = vperm.xlu0 %1232, %v428_v10   ;;  %610 = vperm.xlu1 %1233, %v427_v11  }
  0x2e   : > { %605 = vperm.xlu0 %1232, %v426_v12   ;;  %600 = vperm.xlu1 %1233, %v425_v13  }
  0x32   : > { %651 = vperm.xlu0 %1232, %v633_v14   ;;  %646 = vperm.xlu1 %1233, %v632_v15  }
  0x36   : > { %641 = vperm.xlu0 %1232, %v631_v16   ;;  %636 = vperm.xlu1 %1233, %v630_v17  }
  0x3a   : > { %784 = vperm.xlu0 %1232, %v766_v19   ;;  %779 = vperm.xlu1 %1233, %v765_v20  }
  0x3e   : > { %774 = vperm.xlu0 %1232, %v764_v21   ;;  %769 = vperm.xlu1 %1233, %v763_v22  }
  0x42   : > { %896 = vperm.xlu0 %1232, %v893_v23  }
  0x95   : > { %v486_v25 = vpop.permute.xlu1 %485  ;;  %v452_v26 = vpop.permute.xlu0 %451 }
  0x96   : > { %v463_v27 = vmul.f32 %v1074_v24, %v452_v26  ;;  %v761_v26 = vld [vmem:[%s1630_s7 + $0x10] sm:$0xff] }
  0x98   : > { %v491_v28 = vadd.f32 %v486_v25, %v463_v27  ;;  %v760_v25 = vld [vmem:[%s1630_s7 + $0x8] sm:$0xff]  ;;  %v762_v27 = vld [vmem:[%s1630_s7 + $0x18] sm:$0xff] }
  0x99   : > { %v447_v29 = vpop.permute.xlu0 %446  ;;  %v442_v30 = vpop.permute.xlu1 %441 }
  0x9a   : > { %1234 = vtanh.f32 %v491_v28  ;;  %v462_v31 = vmul.f32 %v1074_v24, %v447_v29  ;;  %v461_v35 = vmul.f32 %v1074_v24, %v442_v30  ;;  %v1345_v28 = vmov 0.0  }
  0x9d   : > { %v481_v32 = vpop.permute.xlu0 %480  ;;  %v437_v33 = vpop.permute.xlu1 %436 }
  0x9e   : > { %v490_v34 = vadd.f32 %v481_v32, %v462_v31  ;;  %v460_v36 = vmul.f32 %v1074_v24, %v437_v33 }
  0xa0   : > { %1236 = vtanh.f32 %v490_v34 }
  0xa1   : > { %v476_v37 = vpop.permute.xlu0 %475  ;;  %v471_v38 = vpop.permute.xlu1 %470 }
  0xa2   : > { %v489_v39 = vadd.f32 %v476_v37, %v461_v35  ;;  %v488_v40 = vadd.f32 %v471_v38, %v460_v36 }
  0xa4   : > { %1238 = vtanh.f32 %v489_v39 }
  0xa5   : > { %1240 = vtanh.f32 %v488_v40  ;;  %v616_v49 = vpop.permute.xlu0 %615  ;;  %v611_v51 = vpop.permute.xlu1 %610 }
  0xa7   : > { %v1235_v41 = vpop.eup %1234 }
  0xa8   : > { %1121 = vmatprep.subr.mxu0 %v1235_v41 }
  0xa9   : > { %1122 = vmatpush3.msra.mxu0 %v1235_v41  ;;  %v606_v55 = vpop.permute.xlu0 %605  ;;  %v601_v59 = vpop.permute.xlu1 %600 }
  0xad   : > { %v1237_v42 = vpop.eup %1236  ;;  %v652_v5 = vpop.permute.xlu0 %651 }
  0xae   : > { %1123 = vmatprep.subr.mxu0 %v1237_v42  ;;  %v647_v6 = vpop.permute.xlu1 %646 }
  0xaf   : > { %1124 = vmatpush3.msra.mxu0 %v1237_v42 }
  0xb1   : > { %v1239_v43 = vpop.eup %1238  ;;  %v642_v9 = vpop.permute.xlu0 %641 }
  0xb2   : > { %1125 = vmatprep.subr.mxu0 %v1239_v43  ;;  %v1241_v44 = vpop.eup %1240  ;;  %v637_v13 = vpop.permute.xlu1 %636 }
  0xb3   : > { %1126 = vmatpush3.msra.mxu0 %v1239_v43 }
  0xb4   : > { %1127 = vmatprep.subr.mxu0 %v1241_v44 }
  0xb5   : > { %1128 = vmatpush3.msra.mxu0 %v1241_v44  ;;  %v785_v29 = vpop.permute.xlu0 %784 }
  0xb6   : > { %1130 = vmatmul.mubr.msk.f32.vlgmr.msra.gmra.mxu0 %vm500_vm0, %v497_v45  ;;  %v780_v30 = vpop.permute.xlu1 %779 }
  0xb7   : > { %1132 = vmatprep.mubr.msk.f32.mxu0 %vm500_vm0, %v498_v46 }
  0xb9   : > { %v775_v33 = vpop.permute.xlu0 %774 }
  0xba   : > { %1133 = vmatmul.mubr.msk.f32.gmra.mxu0 %vm500_vm0, %v499_v47  ;;  %v770_v37 = vpop.permute.xlu1 %769 }
  0xbb   : > { %1157 = vmatprep.mubr.msk.f32.mxu0 %vm500_vm0, %v759_v4 }
 0x176   : > { %v1131_v50 = vpop.f32.mrf.mxu0 }
 0x177   : > { %v619_v57 = vadd.f32 %v1131_v50, %v606_v55  ;;  %v899_v50 = vlaneseq }
 0x178   : > { %v579_v52 = vpop.f32.mrf.mxu0 }
 0x179   : > { %v618_v60 = vadd.f32 %v601_v59, %v579_v52 }
 0x17a   : > { %v1134_v53 = vpop.f32.mrf.mxu0 }
 0x17b   : > { %v621_v54 = vadd.f32 %v1134_v53, %v616_v49  ;;  %v892_v49 = vld [vmem:[%s1632_s9] sm:$0x1]  ;;  %v897_v53 = vpop.permute.xlu0 %896 }
 0x17c   : > { %v589_v56 = vpop.f32.mrf.mxu0 }
 0x17d   : > { %1242 = vtanh.f32 %v621_v54  ;;  %v620_v58 = vadd.f32 %v611_v51, %v589_v56  ;;  %v900_v51 = vshrl.u32 %v899_v50, 7 }
 0x17f   : > { %1244 = vtanh.f32 %v620_v58  ;;  %v901_v52 = vsub.s32 0, %v900_v51 }
 0x180   : > { %1246 = vtanh.f32 %v619_v57 }
 0x181   : > { %1248 = vtanh.f32 %v618_v60  ;;  %v902_v54 = vrot.slane %v897_v53, %v901_v52 }
 0x18a   : > { %v1243_v61 = vpop.eup %1242 }
 0x18b   : > { %1135 = vmatprep.subr.mxu1 %v1243_v61 }
 0x18c   : > { %v1245_v62 = vpop.eup %1244  ;;  %1136 = vmatpush3.msra.mxu1 %v1243_v61 }
 0x18d   : > { %1137 = vmatprep.subr.mxu1 %v1245_v62  ;;  %v1247_v63 = vpop.eup %1246 }
 0x18e   : > { %1138 = vmatpush3.msra.mxu1 %v1245_v62  ;;  %v1249_v0 = vpop.eup %1248 }
 0x18f   : > { %1139 = vmatprep.subr.mxu1 %v1247_v63 }
 0x190   : > { %1140 = vmatpush3.msra.mxu1 %v1247_v63 }
 0x191   : > { %1141 = vmatprep.subr.mxu1 %v1249_v0 }
 0x192   : > { %1142 = vmatpush3.msra.mxu1 %v1249_v0 }
 0x193   : > { %1144 = vmatmul.mubr.msk.f32.vlgmr.msra.gmra.mxu1 %vm500_vm0, %v627_v1  ;;  %1163 = vmatprep.subr.mxu1 %v1345_v28 }
 0x194   : > { %1146 = vmatprep.mubr.msk.f32.mxu1 %vm500_vm0, %v628_v2 }
 0x197   : > { %1147 = vmatmul.mubr.msk.f32.gmra.mxu1 %vm500_vm0, %v629_v3 }
 0x198   : > { %1171 = vmatprep.mubr.msk.f32.mxu1 %vm1346_vm1, %v1345_v28 }
 0x253   : > { %v1145_v7 = vpop.f32.mrf.mxu1 }
 0x254   : > { %v738_v10 = vadd.f32 %v1145_v7, %v642_v9 }
 0x255   : > { %v732_v8 = vpop.f32.mrf.mxu1 }
 0x256   : > { %v733_v15 = vadd.f32 %v732_v8, %v637_v13 }
 0x257   : > { %v1148_v11 = vpop.f32.mrf.mxu1 }
 0x258   : > { %v748_v12 = vadd.f32 %v1148_v11, %v652_v5 }
 0x259   : > { %v742_v14 = vpop.f32.mrf.mxu1 }
 0x25a   : > { %1250 = vtanh.f32 %v748_v12  ;;  %v743_v16 = vadd.f32 %v742_v14, %v647_v6 }
 0x25b   : > { %1252 = vtanh.f32 %v738_v10 }
 0x25c   : > { %1254 = vtanh.f32 %v743_v16 }
 0x25d   : > { %1256 = vtanh.f32 %v733_v15 }
 0x267   : > { %v1251_v17 = vpop.eup %1250 }
 0x268   : > { %v1253_v18 = vpop.eup %1252  ;;  %v758_v19 = vadd.f32 %v1251_v17, %v1243_v61 }
 0x269   : > { %v1255_v20 = vpop.eup %1254  ;;  %v756_v23 = vadd.f32 %v1253_v18, %v1247_v63 }
 0x26a   : > { %1149 = vmatprep.subr.mxu0 %v758_v19  ;;  %v757_v21 = vadd.f32 %v1255_v20, %v1245_v62  ;;  %v1257_v22 = vpop.eup %1256 }
 0x26b   : > { %1150 = vmatpush3.msra.mxu0 %v758_v19  ;;  %v755_v24 = vadd.f32 %v1257_v22, %v1249_v0 }
 0x26c   : > { %1151 = vmatprep.subr.mxu0 %v757_v21 }
 0x26d   : > { %1152 = vmatpush3.msra.mxu0 %v757_v21 }
 0x26e   : > { %1153 = vmatprep.subr.mxu0 %v756_v23 }
 0x26f   : > { %1154 = vmatpush3.msra.mxu0 %v756_v23 }
 0x270   : > { %1155 = vmatprep.subr.mxu0 %v755_v24 }
 0x271   : > { %1156 = vmatpush3.msra.mxu0 %v755_v24 }
 0x272   : > { %1158 = vmatmul.mubr.msk.f32.vlgmr.msra.gmra.mxu0 %vm500_vm0, %v760_v25 }
 0x273   : > { %1160 = vmatprep.mubr.msk.f32.mxu0 %vm500_vm0, %v761_v26 }
 0x276   : > { %1161 = vmatmul.mubr.msk.f32.gmra.mxu0 %vm500_vm0, %v762_v27 }
 0x332   : > { %v1159_v31 = vpop.f32.mrf.mxu0 }
 0x333   : > { %v871_v34 = vadd.f32 %v1159_v31, %v775_v33 }
 0x334   : > { %v865_v32 = vpop.f32.mrf.mxu0 }
 0x335   : > { %v866_v39 = vadd.f32 %v865_v32, %v770_v37 }
 0x336   : > { %v1162_v35 = vpop.f32.mrf.mxu0 }
 0x337   : > { %v881_v36 = vadd.f32 %v1162_v35, %v785_v29 }
 0x338   : > { %v875_v38 = vpop.f32.mrf.mxu0 }
 0x339   : > { %1258 = vtanh.f32 %v881_v36  ;;  %v876_v40 = vadd.f32 %v875_v38, %v780_v30 }
 0x33a   : > { %1260 = vtanh.f32 %v871_v34 }
 0x33b   : > { %1262 = vtanh.f32 %v876_v40 }
 0x33c   : > { %1264 = vtanh.f32 %v866_v39 }
 0x346   : > { %v1259_v41 = vpop.eup %1258 }
 0x347   : > { %v1261_v42 = vpop.eup %1260  ;;  %v891_v43 = vadd.f32 %v1259_v41, %v758_v19 }
 0x348   : > { %v1263_v44 = vpop.eup %1262  ;;  %v889_v47 = vadd.f32 %v1261_v42, %v756_v23 }
 0x349   : > { %1164 = vmatpush3.msra.mxu1 %v891_v43  ;;  %v890_v45 = vadd.f32 %v1263_v44, %v757_v21  ;;  %v1265_v46 = vpop.eup %1264 }
 0x34a   : > { %1165 = vmatprep.subr.mxu1 %v1345_v28  ;;  %v888_v48 = vadd.f32 %v1265_v46, %v755_v24 }
 0x34b   : > { %1166 = vmatpush3.msra.mxu1 %v890_v45 }
 0x34c   : > { %1167 = vmatprep.subr.mxu1 %v1345_v28 }
 0x34d   : > { %1168 = vmatpush3.msra.mxu1 %v889_v47 }
 0x34e   : > { %1169 = vmatprep.subr.mxu1 %v1345_v28 }
 0x34f   : > { %1170 = vmatpush3.msra.mxu1 %v888_v48 }
 0x350   : > { %1172 = vmatmul.mubr.msk.f32.vlgmr.msra.gmra.mxu1 %vm500_vm0, %v892_v49 }
 0x410   : > { %v972_v55 = vpop.f32.mrf.mxu1 }
 0x411   : > { %v973_v56 = vadd.f32 %v972_v55, %v902_v54 }
 0x412   : > { %v1173_v57 = vpop.f32.mrf.mxu1 }
 0x413   : > { %976 = vst [vmem:[%s413_s13] sm:$0x1] %v973_v56 }
 0x414   : > { %1279 = shalt.err (!%p1276_p5)
}
 0x415   : > { %s1280_s25 = scalar_lea.hbm %s1583_s23, 16  ;;  %s1284_s13 = scalar_lea.hbm %s1634_s11, 32 }
 0x416   : > { %p1281_p6 = scmp.ne.s32.totalorder %s1583_s23, %s1280_s25  ;;  %p1285_p10 = scmp.lt.s32.totalorder %s1583_s23, %s1634_s11 }
 0x417   : > { %p1286_p11 = scmp.lt.s32.totalorder %s1284_s13, %s1280_s25 }
 0x418   : > { %p1282_p7 = pnand %p1281_p6, %p1451_p4 }
 0x419   : > { %p1287_p12 = por %p1286_p11, %p1285_p10 }
 0x41a   : > { %p1283_p9 = pneg %p1282_p7 }
 0x41c   : > { %p1288_p13 = pnand %p1287_p12, %p1283_p9 }
 0x41e   : > { %1291 = shalt.err (!%p1288_p13)
}
 0x41f   : > { %1174 = dma.vmem_to_hbm [thread:$0]  (%p1451_p4), %s992_s14, 16, %s1583_s23, %s978_s26  }
 0x420 PF: > { %p1180_p0 = scmp.ge.s32.totalorder %s1342_s24, 2  ;;  %s1003_s16 = sand.u32 1, %s1322_s19  }
 0x421   : > { %s1004_s22 = scalar_lea.sflag [#allocation4], %s1003_s16 }
 0x422   : > { %p1177_p1 = pnand %p1180_p0, %p1458_p8 }
 0x424   : > { %p1178_p2 = pneg %p1177_p1 }
 0x426   : > { %1317 = dma.done.wait (%p1178_p2), %s1004_s22, 16  }
 0x427   : > { %1319 = vsyncadd (%p1178_p2), %s1004_s22, 4294967280  ;;  %s26_s24 = sadd.s32 1, %s1342_s24   ;;  %s1641_s22 = sld [smem:[#allocation6_spill]] }
 0x428   : > { %p23_p3 = scmp.ge.s32.totalorder %s26_s24, 4   ;;  %s1642_s23 = sld [smem:[#allocation7_spill]] }
 0x429   : > { %s1643_s19 = smov %s1326_s20  ;;  %s1644_s20 = smov %s1330_s21 }
 0x42a   : > { %s1645_s21 = smov %s1464_s12  ;;  %25 = sbr.rel (!%p23_p3) target bundleno = 7 (0x7), region = 102 }
 0x42f   :  { %1008 = vsyncpa [#allocation4], 1 }
 0x430   :  { %1010 = vsyncpa [#allocation4 + $0x1], 1 }

</bundles_post_ra>
